<compile_context>
chip_gen: v6e
topology: v6e:2x2x1
jax: 0.10.0
libtpu: 0.0.40
codegen_flags: <defaults>
</compile_context>

<pallas_src>
import functools

import jax
import jax.numpy as jnp
from jax.experimental import pallas as pl
from jax.experimental.pallas import tpu as pltpu


def _tpu_generation():
    """Best-effort TPU generation from device_kind; 0 if unknown."""
    try:
        kind = jax.devices()[0].device_kind.lower()
    except Exception:
        return 0
    for g in (7, 6, 5, 4, 3, 2):
        if f"v{g}" in kind:
            return g
    return 0


def _mish(x, use_bf16):
    # mish(x) = x * tanh(softplus(x)), softplus with torch's threshold=20.
    # With e = exp(x):  tanh(log1p(e)) = e*(e+2) / (e*(e+2) + 2).
    xs = jnp.minimum(x, 20.0)
    if use_bf16:
        # bf16 EUP exp on v6e/v7x (EUP is the saturating VLIW slot there);
        # the cheap VPU polynomial part stays bf16 too, rcp stays f32
        # (pl.reciprocal approx only lowers for float32).
        e = jnp.exp(xs.astype(jnp.bfloat16))
        n = (e * (e + 2.0)).astype(jnp.float32)
    else:
        e = jnp.exp(xs)
        n = e * (e + 2.0)
    t = n * pl.reciprocal(n + 2.0, approx=True)
    # For x > 20 torch returns x * tanh(x) == x in f32 (tanh saturates).
    return jnp.where(x > 20.0, x, x * t)


def _sigmoid(x):
    # sigmoid(z) = 0.5 * (tanh(z/2) + 1): a single EUP op on the sublane-padded
    # [1, tile_b] row (vs exp + reciprocal), no clamping needed.
    return 0.5 * jnp.tanh(0.5 * x) + 0.5


def mlp_kernel(x_ref, w1_ref, b1_ref, w2_ref, b2_ref, w3_ref, b3_ref, o_ref,
               *, use_bf16):
    x = x_ref[...]                                                   # [15, TB]

    h1 = jnp.dot(w1_ref[...], x, preferred_element_type=jnp.float32) + b1_ref[...]
    h1 = _mish(h1, use_bf16)                                         # [12, TB]

    h2 = jnp.dot(w2_ref[...], h1, preferred_element_type=jnp.float32) + b2_ref[...]
    h2 = _mish(h2, use_bf16)                                         # [8, TB]

    # Final 8 -> 1 layer as a VPU multiply + sublane reduce (an MXU pass with
    # N == 1 would be ~1% utilized).
    h3 = jnp.sum(w3_ref[...] * h2, axis=0, keepdims=True) + b3_ref[...]   # [1, TB]

    o_ref[...] = _sigmoid(h3)                                        # [1, TB]


def model_forward_fm(x_fm, params, *, tile_b=None, use_bf16=None):
    """Fast path.  x_fm: FEATURE-MAJOR activations [15, B] float32 (batch on
    the lane axis).  Returns [B, 1] float32, matching the PyTorch forward."""
    f_in, B = x_fm.shape
    assert f_in == 15, f"expected [15, B] feature-major input, got {x_fm.shape}"

    w1, b1 = params["w1"], params["b1"]
    w2, b2 = params["w2"], params["b2"]
    w3, b3 = params["w3"], params["b3"]

    gen = _tpu_generation()
    if use_bf16 is None:
        use_bf16 = gen >= 6          # bf16 EUP/VPU only on v6e/v7x
    if tile_b is None:
        if gen >= 7:
            tile_b = 32768           # 64 MiB VMEM: budget incl. full-tile temps
        elif gen >= 5:
            tile_b = 65536           # 128 MiB VMEM: amortize per-step overhead
        else:
            tile_b = 8192            # unknown/older: stay inside scoped default
    if gen >= 7:
        # Keep >= 4 grid steps so the "parallel" batch axis can be split
        # across the two v7x TensorCores.
        tile_b = min(tile_b, max(128, 128 * pl.cdiv(pl.cdiv(B, 4), 128)))

    # Lane-dense batch tile: multiple of 128, no larger than the lane-padded B.
    tile_b = int(max(128, 128 * (min(tile_b, 128 * pl.cdiv(B, 128)) // 128)))
    n_tiles = pl.cdiv(B, tile_b)     # partial final block handled by Pallas

    cp_kwargs = dict(dimension_semantics=("parallel",))
    if gen >= 7:
        cp_kwargs["vmem_limit_bytes"] = 48 << 20
    elif gen >= 5:
        cp_kwargs["vmem_limit_bytes"] = 100 << 20

    const = lambda a: pl.BlockSpec(a.shape, lambda i: (0, 0))

    out = pl.pallas_call(
        functools.partial(mlp_kernel, use_bf16=use_bf16),
        out_shape=jax.ShapeDtypeStruct((1, B), jnp.float32),
        grid=(n_tiles,),
        in_specs=[
            pl.BlockSpec((15, tile_b), lambda i: (0, i)),
            const(w1), const(b1),
            const(w2), const(b2),
            const(w3), const(b3),
        ],
        out_specs=pl.BlockSpec((1, tile_b), lambda i: (0, i)),
        compiler_params=pltpu.CompilerParams(**cp_kwargs),
    )(x_fm, w1, b1, w2, b2, w3, b3)

    return out.T                                                     # [B, 1]


def model_forward(x, params, **kwargs):
    """Batch-major convenience path, x: [B, 15] (matches nn.Module.forward).
    The transpose costs one extra HBM pass; producers that can emit
    feature-major activations should call model_forward_fm directly."""
    return model_forward_fm(x.T, params, **kwargs)


def init_params(key):
    """Deterministic init mirroring nn.Linear (weights stored [out, in],
    biases as [out, 1] columns; last layer as [in, 1] for the VPU reduce)."""
    ks = jax.random.split(key, 6)

    def linear(kw, kb, fan_in, fan_out):
        bound = 1.0 / jnp.sqrt(jnp.float32(fan_in))
        w = jax.random.uniform(kw, (fan_out, fan_in), jnp.float32, -bound, bound)
        b = jax.random.uniform(kb, (fan_out, 1), jnp.float32, -bound, bound)
        return w, b

    w1, b1 = linear(ks[0], ks[1], 15, 12)       # [12,15], [12,1]
    w2, b2 = linear(ks[2], ks[3], 12, 8)        # [8,12],  [8,1]
    w3o, b3 = linear(ks[4], ks[5], 8, 1)        # [1,8],   [1,1]
    w3 = w3o.T                                   # [8,1] column for the VPU reduce
    return {"w1": w1, "b1": b1, "w2": w2, "b2": b2, "w3": w3, "b3": b3}


def reference_forward(x, p):
    """Pure-JAX reference faithful to the PyTorch module (exact softplus/tanh)."""
    def mish(v):
        sp = jnp.where(v > 20.0, v, jnp.log1p(jnp.exp(jnp.minimum(v, 20.0))))
        return v * jnp.tanh(sp)

    h = mish(x @ p["w1"].T + p["b1"][:, 0])
    h = mish(h @ p["w2"].T + p["b2"][:, 0])
    return jax.nn.sigmoid(h @ p["w3"] + p["b3"][0])


if __name__ == "__main__":
    key = jax.random.PRNGKey(0)
    k_params, k_x = jax.random.split(key)

    params = init_params(k_params)
    B = 300  # not a multiple of 128 -> exercises the partial-block path
    x = jax.random.normal(k_x, (B, 15), dtype=jnp.float32)
    ref = reference_forward(x, params)

    # Default tiling (single block at this tiny batch).
    out_default = jax.block_until_ready(model_forward(x, params))
    # Small tile: 3 grid steps (2 full + 1 partial) through the same kernel.
    out_small = jax.block_until_ready(model_forward(x, params, tile_b=128))

    # approx EUP reciprocal (all chips) + bf16 exp in Mish (v6e/v7x only)
    tol = 2e-2 if _tpu_generation() >= 6 else 5e-3
    assert out_default.shape == (B, 1)
    assert out_small.shape == (B, 1)
    assert jnp.allclose(out_default, ref, atol=tol, rtol=tol)
    assert jnp.allclose(out_small, ref, atol=tol, rtol=tol)

    print("KERNEL_OK")
</pallas_src>

<mosaic_0001>
module attributes {stable_mosaic.version = 11 : i64} {
  func.func @mlp_kernel(%arg0: i32, %arg1: memref<15x384xf32, #tpu.memory_space<vmem>>, %arg2: memref<12x15xf32, #tpu.memory_space<vmem>>, %arg3: memref<12x1xf32, #tpu.memory_space<vmem>>, %arg4: memref<8x12xf32, #tpu.memory_space<vmem>>, %arg5: memref<8x1xf32, #tpu.memory_space<vmem>>, %arg6: memref<8x1xf32, #tpu.memory_space<vmem>>, %arg7: memref<1x1xf32, #tpu.memory_space<vmem>>, %arg8: memref<1x384xf32, #tpu.memory_space<vmem>>) attributes {dimension_semantics = [#tpu.dimension_semantics<parallel>], iteration_bounds = array<i64: 1>, scalar_prefetch = 0 : i64, scratch_operands = 0 : i64, tpu.core_type = #tpu.core_type<tc>, window_params = [{transform_indices = @transform_0, window_bounds = array<i64: 15, 384>}, {pipeline_mode = #tpu.pipeline_mode<synchronous>, transform_indices = @transform_1, window_bounds = array<i64: 12, 15>}, {pipeline_mode = #tpu.pipeline_mode<synchronous>, transform_indices = @transform_2, window_bounds = array<i64: 12, 1>}, {pipeline_mode = #tpu.pipeline_mode<synchronous>, transform_indices = @transform_3, window_bounds = array<i64: 8, 12>}, {pipeline_mode = #tpu.pipeline_mode<synchronous>, transform_indices = @transform_4, window_bounds = array<i64: 8, 1>}, {pipeline_mode = #tpu.pipeline_mode<synchronous>, transform_indices = @transform_5, window_bounds = array<i64: 8, 1>}, {pipeline_mode = #tpu.pipeline_mode<synchronous>, transform_indices = @transform_6, window_bounds = array<i64: 1, 1>}, {transform_indices = @transform_7, window_bounds = array<i64: 1, 384>}]} {
    %c0 = arith.constant 0 : index
    %c0_0 = arith.constant 0 : index
    %0 = vector.load %arg1[%c0, %c0_0] : memref<15x384xf32, #tpu.memory_space<vmem>>, vector<15x384xf32>
    %c0_1 = arith.constant 0 : index
    %c0_2 = arith.constant 0 : index
    %1 = vector.load %arg2[%c0_1, %c0_2] : memref<12x15xf32, #tpu.memory_space<vmem>>, vector<12x15xf32>
    %cst = arith.constant dense<0.000000e+00> : vector<12x384xf32>
    %2 = tpu.matmul %1, %0, %cst {dimension_numbers = #tpu.dot_dimension_numbers<[1], [0], [0], [1], [0, 0, 1, 1], [], []>} : vector<12x15xf32>, vector<15x384xf32>, vector<12x384xf32> -> vector<12x384xf32>
    %c0_3 = arith.constant 0 : index
    %c0_4 = arith.constant 0 : index
    %3 = vector.load %arg3[%c0_3, %c0_4] : memref<12x1xf32, #tpu.memory_space<vmem>>, vector<12x1xf32>
    %4 = vector.broadcast %3 : vector<12x1xf32> to vector<12x384xf32>
    %5 = arith.addf %2, %4 : vector<12x384xf32>
    %cst_5 = arith.constant 2.000000e+01 : f32
    %6 = vector.broadcast %cst_5 : f32 to vector<12x384xf32>
    %7 = arith.minimumf %5, %6 : vector<12x384xf32>
    %8 = math.exp %7 : vector<12x384xf32>
    %cst_6 = arith.constant 2.000000e+00 : f32
    %9 = vector.broadcast %cst_6 : f32 to vector<12x384xf32>
    %10 = arith.addf %8, %9 : vector<12x384xf32>
    %11 = arith.mulf %8, %10 : vector<12x384xf32>
    %cst_7 = arith.constant 2.000000e+00 : f32
    %12 = vector.broadcast %cst_7 : f32 to vector<12x384xf32>
    %13 = arith.addf %11, %12 : vector<12x384xf32>
    %14 = tpu.reciprocal %13 {approx = true} : vector<12x384xf32> -> vector<12x384xf32>
    %15 = arith.mulf %11, %14 : vector<12x384xf32>
    %cst_8 = arith.constant 2.000000e+01 : f32
    %16 = vector.broadcast %cst_8 : f32 to vector<12x384xf32>
    %17 = arith.cmpf ogt, %5, %16 : vector<12x384xf32>
    %18 = arith.mulf %5, %15 : vector<12x384xf32>
    %19 = arith.select %17, %5, %18 : vector<12x384xi1>, vector<12x384xf32>
    %c0_9 = arith.constant 0 : index
    %c0_10 = arith.constant 0 : index
    %20 = vector.load %arg4[%c0_9, %c0_10] : memref<8x12xf32, #tpu.memory_space<vmem>>, vector<8x12xf32>
    %cst_11 = arith.constant dense<0.000000e+00> : vector<8x384xf32>
    %21 = tpu.matmul %20, %19, %cst_11 {dimension_numbers = #tpu.dot_dimension_numbers<[1], [0], [0], [1], [0, 0, 1, 1], [], []>} : vector<8x12xf32>, vector<12x384xf32>, vector<8x384xf32> -> vector<8x384xf32>
    %c0_12 = arith.constant 0 : index
    %c0_13 = arith.constant 0 : index
    %22 = vector.load %arg5[%c0_12, %c0_13] : memref<8x1xf32, #tpu.memory_space<vmem>>, vector<8x1xf32>
    %23 = vector.broadcast %22 : vector<8x1xf32> to vector<8x384xf32>
    %24 = arith.addf %21, %23 : vector<8x384xf32>
    %cst_14 = arith.constant 2.000000e+01 : f32
    %25 = vector.broadcast %cst_14 : f32 to vector<8x384xf32>
    %26 = arith.minimumf %24, %25 : vector<8x384xf32>
    %27 = math.exp %26 : vector<8x384xf32>
    %cst_15 = arith.constant 2.000000e+00 : f32
    %28 = vector.broadcast %cst_15 : f32 to vector<8x384xf32>
    %29 = arith.addf %27, %28 : vector<8x384xf32>
    %30 = arith.mulf %27, %29 : vector<8x384xf32>
    %cst_16 = arith.constant 2.000000e+00 : f32
    %31 = vector.broadcast %cst_16 : f32 to vector<8x384xf32>
    %32 = arith.addf %30, %31 : vector<8x384xf32>
    %33 = tpu.reciprocal %32 {approx = true} : vector<8x384xf32> -> vector<8x384xf32>
    %34 = arith.mulf %30, %33 : vector<8x384xf32>
    %cst_17 = arith.constant 2.000000e+01 : f32
    %35 = vector.broadcast %cst_17 : f32 to vector<8x384xf32>
    %36 = arith.cmpf ogt, %24, %35 : vector<8x384xf32>
    %37 = arith.mulf %24, %34 : vector<8x384xf32>
    %38 = arith.select %36, %24, %37 : vector<8x384xi1>, vector<8x384xf32>
    %c0_18 = arith.constant 0 : index
    %c0_19 = arith.constant 0 : index
    %39 = vector.load %arg6[%c0_18, %c0_19] : memref<8x1xf32, #tpu.memory_space<vmem>>, vector<8x1xf32>
    %40 = vector.broadcast %39 : vector<8x1xf32> to vector<8x384xf32>
    %41 = arith.mulf %40, %38 : vector<8x384xf32>
    %cst_20 = arith.constant dense<0.000000e+00> : vector<384xf32>
    %42 = vector.multi_reduction <add>, %41, %cst_20 [0] : vector<8x384xf32> to vector<384xf32>
    %43 = vector.shape_cast %42 : vector<384xf32> to vector<1x384xf32>
    %c0_21 = arith.constant 0 : index
    %c0_22 = arith.constant 0 : index
    %44 = vector.load %arg7[%c0_21, %c0_22] : memref<1x1xf32, #tpu.memory_space<vmem>>, vector<1x1xf32>
    %45 = vector.broadcast %44 : vector<1x1xf32> to vector<1x384xf32>
    %46 = arith.addf %43, %45 : vector<1x384xf32>
    %cst_23 = arith.constant 5.000000e-01 : f32
    %47 = vector.broadcast %cst_23 : f32 to vector<1x384xf32>
    %48 = arith.mulf %47, %46 : vector<1x384xf32>
    %49 = math.tanh %48 : vector<1x384xf32>
    %cst_24 = arith.constant 5.000000e-01 : f32
    %50 = vector.broadcast %cst_24 : f32 to vector<1x384xf32>
    %51 = arith.mulf %50, %49 : vector<1x384xf32>
    %cst_25 = arith.constant 5.000000e-01 : f32
    %52 = vector.broadcast %cst_25 : f32 to vector<1x384xf32>
    %53 = arith.addf %51, %52 : vector<1x384xf32>
    %c0_26 = arith.constant 0 : index
    %c0_27 = arith.constant 0 : index
    %54 = vector.load %arg8[%c0_26, %c0_27] : memref<1x384xf32, #tpu.memory_space<vmem>>, vector<1x384xf32>
    tpu.vector_store %arg8[%c0_26, %c0_27], %53 {strides = array<i32>} : memref<1x384xf32, #tpu.memory_space<vmem>>, vector<1x384xf32>,
    return
  }
  func.func @transform_0(%arg0: i32) -> (i32, i32) {
    %c0_i32 = arith.constant 0 : i32
    %c0_i32_0 = arith.constant 0 : i32
    return %c0_i32, %arg0 : i32, i32
  }
  func.func @transform_1(%arg0: i32) -> (i32, i32) {
    %c0_i32 = arith.constant 0 : i32
    %c0_i32_0 = arith.constant 0 : i32
    %c0_i32_1 = arith.constant 0 : i32
    return %c0_i32, %c0_i32_0 : i32, i32
  }
  func.func @transform_2(%arg0: i32) -> (i32, i32) {
    %c0_i32 = arith.constant 0 : i32
    %c0_i32_0 = arith.constant 0 : i32
    %c0_i32_1 = arith.constant 0 : i32
    return %c0_i32, %c0_i32_0 : i32, i32
  }
  func.func @transform_3(%arg0: i32) -> (i32, i32) {
    %c0_i32 = arith.constant 0 : i32
    %c0_i32_0 = arith.constant 0 : i32
    %c0_i32_1 = arith.constant 0 : i32
    return %c0_i32, %c0_i32_0 : i32, i32
  }
  func.func @transform_4(%arg0: i32) -> (i32, i32) {
    %c0_i32 = arith.constant 0 : i32
    %c0_i32_0 = arith.constant 0 : i32
    %c0_i32_1 = arith.constant 0 : i32
    return %c0_i32, %c0_i32_0 : i32, i32
  }
  func.func @transform_5(%arg0: i32) -> (i32, i32) {
    %c0_i32 = arith.constant 0 : i32
    %c0_i32_0 = arith.constant 0 : i32
    %c0_i32_1 = arith.constant 0 : i32
    return %c0_i32, %c0_i32_0 : i32, i32
  }
  func.func @transform_6(%arg0: i32) -> (i32, i32) {
    %c0_i32 = arith.constant 0 : i32
    %c0_i32_0 = arith.constant 0 : i32
    %c0_i32_1 = arith.constant 0 : i32
    return %c0_i32, %c0_i32_0 : i32, i32
  }
  func.func @transform_7(%arg0: i32) -> (i32, i32) {
    %c0_i32 = arith.constant 0 : i32
    %c0_i32_0 = arith.constant 0 : i32
    return %c0_i32, %arg0 : i32, i32
  }
}

</mosaic_0001>

<bundles_post_ra>
// kernel: tpu_custom_call.1
= control target key start
LH: loop header
LB: loop body
LE: loop exit
PB: predicated region body
PF: predicated region fallthrough
CT: control target
= control target key end

     0   :  { %s848_s0 = inlined_call_operand.hbm [shape: f32[15,300], index: 0, kind: input, shape index: {}]   ;;  %s849_s1 = inlined_call_operand.vmem [shape: f32[12,15], index: 1, kind: input, shape index: {}]   ;;  %s850_s2 = inlined_call_operand.vmem [shape: f32[12,1], index: 2, kind: input, shape index: {}]   ;;  %s851_s3 = inlined_call_operand.vmem [shape: f32[8,12], index: 3, kind: input, shape index: {}]   ;;  %s852_s4 = inlined_call_operand.vmem [shape: f32[8,1], index: 4, kind: input, shape index: {}]   ;;  %s853_s5 = inlined_call_operand.vmem [shape: f32[8,1], index: 5, kind: input, shape index: {}]   ;;  %s854_s6 = inlined_call_operand.<no memory space> [shape: f32[1,1], index: 6, kind: input, shape index: {}]   ;;  %s855_s7 = inlined_call_operand.hbm [shape: f32[1,300], index: 7, kind: output, shape index: {}]  }
   0x1   :  { %v12_v0 = vstv %s854_s6 }
   0x2   :  { %13 = vst [vmem:[#allocation2] sm:$0x1] %v12_v0 }
   0x3   :  { %14 = vsyncpa [#allocation4], 0 }
   0x4   :  { %15 = vsyncpa [#allocation5], 0  ;;  %s721_s26 = smov [#allocation3]  }
   0x5   :  { %s21_s27 = sshll.u32 %s721_s26, 4  ;;  %s22_s27 = int_to_ptr.vmem [resolvable:$true] %s21_s27 }
   0x6   :  { %s685_s28 = scalar_lea.vmem %s22_s27, 768  ;;  %p690_p1 = scmp.lt.s32.totalorder %s22_s27, %s22_s27 }
   0x7   :  { %p686_p0 = scmp.ne.s32.totalorder %s22_s27, %s685_s28  ;;  %p691_p2 = scmp.lt.s32.totalorder %s685_s28, %s685_s28 }
   0x9   :  { %p692_p3 = por %p691_p2, %p690_p1 }
   0xb   :  { %p693_p4 = pnand %p692_p3, %p686_p0 }
   0xd   :  { %696 = shalt.err (!%p693_p4)
}
   0xe   :  { %s722_s29 = smov 384   ;;  %s723_s30 = smov 24  }
   0xf   :  { %27 = dma.hbm_to_vmem [thread:$0]  %s848_s0, 768, %s22_s27, [#allocation4], %s722_s29, %s722_s29, %s723_s30  }
  0x10   :  { %717 = dma.done.wait [#allocation4], 768  }
  0x11   :  { %718 = vsyncadd [#allocation4], 4294966528  ;;  %v724_v1 = vmov 0.0   ;;  %v725_v2 = vmov 0   ;;  %vm70_vm0 = vcmask 1046528   ;;  %v44_v6 = vld [vmem:[#allocation3 + $0x8] sm:$0xff] }
  0x12   :  { %144 = vmatprep.mubr.f32.mxu0 %v724_v1  ;;  %633 = vset.pattern.permute.xlu0 %v725_v2  ;;  %v47_v3 = vld [vmem:[#allocation3 + $0x20] sm:$0x7f]  ;;  %v48_v4 = vld [vmem:[#allocation3 + $0x28] sm:$0x7f]  ;;  %v46_v5 = vld [vmem:[#allocation3 + $0x18] sm:$0x7f] }
  0x13   :  { %634 = vset.pattern.permute.xlu1 %v725_v2  ;;  %592 = vmatprep.subr.msk.mxu0 %vm70_vm0, %v47_v3  ;;  %v45_v7 = vld [vmem:[#allocation3 + $0x10] sm:$0xff]  ;;  %v43_v8 = vld [vmem:[#allocation3] sm:$0xff]  ;;  %vm63_vm1 = vcmask 121856   ;;  %v520_v13 = vld [vmem:[#allocation2] sm:$0x1]  ;;  %vm726_vm2 = vmmov 0  }
  0x14   :  { %611 = vmatprep.subr.msk.mxu1 %vm70_vm0, %v48_v4  ;;  %593 = vmatpush1.msk.msra.mxu0 %vm70_vm0, %v46_v5  ;;  %v49_v9 = vld [vmem:[%s849_s1] sm:$0xff]  ;;  %v50_v10 = vld [vmem:[%s849_s1 + $0x8] sm:$0xf]  ;;  %vm309_vm3 = vcmask 1043456   ;;  %vm305_vm6 = vcmask 97280  }
  0x15   :  { %612 = vmatpush3.msk.msra.mxu1 %vm70_vm0, %v48_v4  ;;  %110 = vmatprep.subr.mxu0 %v44_v6  ;;  %v52_v11 = vld [vmem:[%s850_s2 + $0x8] sm:$0xf]  ;;  %v51_v12 = vld [vmem:[%s850_s2] sm:$0xff] }
  0x16   :  { %613 = vmatprep.subr.mxu1 %v45_v7  ;;  %111 = vmatpush1.msra.mxu0 %v43_v8  ;;  %v299_v14 = vld [vmem:[%s852_s4] sm:$0xff] }
  0x17   :  { %614 = vmatpush3.msra.mxu1 %v45_v7  ;;  %615 = vmatprep.mubr.msk.f32.mxu1 %vm63_vm1, %v49_v9  ;;  %v493_v15 = vld [vmem:[%s853_s5] sm:$0xff] }
  0x18   :  { %594 = vmatmul.mubr.msk.f32.vlgmr.msra.gmra.mxu0 %vm63_vm1, %v49_v9  ;;  %616 = vmatmul.mubr.msk.f32.vlgmr.msra.gmra.mxu1 %vm63_vm1, %v50_v10 }
  0x19   :  { %150 = vmatprep.mubr.f32.mxu0 %v724_v1  ;;  %60 = vperm.xlu0 %633, %v52_v11  }
  0x1a   :  { %618 = vmatprep.subr.mxu0 %v724_v1  ;;  %383 = vmatprep.mubr.f32.mxu1 %v724_v1 }
  0x1b   :  { %302 = vperm.xlu1 %634, %v299_v14  }
  0x1c   :  { %595 = vmatmul.mubr.msk.f32.gmra.mxu0 %vm63_vm1, %v50_v10 }
  0x1d   :  { %55 = vperm.xlu0 %633, %v51_v12   ;;  %622 = vmatprep.mubr.msk.f32.mxu0 %vm726_vm2, %v724_v1 }
  0x1f   :  { %496 = vperm.xlu1 %634, %v493_v15  }
  0x21   :  { %523 = vperm.xlu0 %633, %v520_v13  }
  0x94   :  { %v61_v16 = vpop.permute.xlu0 %60 }
  0x98   :  { %v56_v17 = vpop.permute.xlu0 %55 }
  0xd8   :  { %v146_v18 = vpop.f32.mrf.mxu0  ;;  %v617_v20 = vpop.f32.mrf.mxu1 }
  0xd9   :  { %v798_v19 = vadd.f32 %v146_v18, %v56_v17  ;;  %v800_v21 = vadd.f32 %v617_v20, %v61_v16 }
  0xda   :  { %v148_v22 = vpop.f32.mrf.mxu0  ;;  %v223_v25 = vpop.f32.mrf.mxu1 }
  0xdb   :  { %v232_v23 = vmin.f32 %v798_v19, 20.0  ;;  %v803_v24 = vadd.f32 %v148_v22, %v56_v17  ;;  %v237_v26 = vmin.f32 %v800_v21, 20.0  ;;  %v806_v27 = vadd.f32 %v223_v25, %v56_v17  ;;  %v298_v17 = vld [vmem:[%s851_s3] sm:$0xff]  ;;  %s728_s3 = smov [#allocation6]  }
  0xdc   :  { %v152_v28 = vpop.f32.mrf.mxu0  ;;  %vm285_vm4 = vcmp.gt.f32.partialorder %v800_v21, 20.0  ;;  %vm280_vm10 = vcmp.gt.f32.partialorder %v798_v19, 20.0  ;;  %s583_s5 = sshll.u32 %s728_s3, 4  ;;  %s584_s5 = int_to_ptr.vmem [resolvable:$true] %s583_s5 }
  0xdd   :  { %v238_v29 = vmul.f32 1.442695, %v232_v23  ;;  %v233_v30 = vmin.f32 %v803_v24, 20.0  ;;  %v809_v31 = vadd.f32 %v152_v28, %v61_v16  ;;  %v248_v32 = vmul.f32 1.442695, %v237_v26  ;;  %s697_s19 = scalar_lea.vmem %s584_s5, 48  ;;  %p702_p6 = scmp.lt.s32.totalorder %s584_s5, %s584_s5 }
  0xde   :  { %v234_v33 = vmin.f32 %v806_v27, 20.0  ;;  %v154_v34 = vpop.f32.mrf.mxu0  ;;  %vm282_vm5 = vcmp.gt.f32.partialorder %v806_v27, 20.0  ;;  %vm281_vm9 = vcmp.gt.f32.partialorder %v803_v24, 20.0  ;;  %p698_p5 = scmp.ne.s32.totalorder %s584_s5, %s697_s19  ;;  %s701_s20 = scalar_lea.vmem %s584_s5, 64 }
  0xdf   :  { %635 = vpow2.f32 %v238_v29  ;;  %v240_v35 = vmul.f32 1.442695, %v233_v30  ;;  %v235_v36 = vmin.f32 %v809_v31, 20.0  ;;  %v813_v37 = vadd.f32 %v154_v34, %v61_v16  ;;  %v303_v29 = vpop.permute.xlu1 %302  ;;  %p703_p7 = scmp.lt.s32.totalorder %s701_s20, %s697_s19 }
  0xe0   :  { %637 = vpow2.f32 %v248_v32  ;;  %v242_v38 = vmul.f32 1.442695, %v234_v33  ;;  %vm283_vm8 = vcmp.gt.f32.partialorder %v809_v31, 20.0 }
  0xe1   :  { %639 = vpow2.f32 %v240_v35  ;;  %v244_v39 = vmul.f32 1.442695, %v235_v36  ;;  %v236_v40 = vmin.f32 %v813_v37, 20.0  ;;  %vm284_vm7 = vcmp.gt.f32.partialorder %v813_v37, 20.0  ;;  %p704_p8 = por %p703_p7, %p702_p6 }
  0xe2   :  { %641 = vpow2.f32 %v242_v38 }
  0xe3   :  { %643 = vpow2.f32 %v244_v39  ;;  %v246_v41 = vmul.f32 1.442695, %v236_v40  ;;  %p705_p9 = pnand %p704_p8, %p698_p5 }
  0xe5   :  { %645 = vpow2.f32 %v246_v41 }
  0xec   :  { %v636_v42 = vpop.eup %635 }
  0xed   :  { %v638_v43 = vpop.eup %637  ;;  %v250_v44 = vadd.f32 2.0, %v636_v42 }
  0xee   :  { %v640_v45 = vpop.eup %639  ;;  %v255_v46 = vadd.f32 2.0, %v638_v43 }
  0xef   :  { %v642_v47 = vpop.eup %641  ;;  %v251_v48 = vadd.f32 2.0, %v640_v45  ;;  %v256_v49 = vmul.f32 %v636_v42, %v250_v44 }
  0xf0   :  { %v644_v50 = vpop.eup %643  ;;  %v261_v51 = vmul.f32 %v638_v43, %v255_v46  ;;  %v252_v52 = vadd.f32 2.0, %v642_v47 }
  0xf1   :  { %v253_v53 = vadd.f32 2.0, %v644_v50  ;;  %v257_v54 = vmul.f32 %v640_v45, %v251_v48  ;;  %v262_v55 = vadd.f32 2.0, %v256_v49 }
  0xf2   :  { %v646_v56 = vpop.eup %645  ;;  %v267_v57 = vadd.f32 2.0, %v261_v51  ;;  %v258_v58 = vmul.f32 %v642_v47, %v252_v52 }
  0xf3   :  { %v259_v59 = vmul.f32 %v644_v50, %v253_v53  ;;  %v254_v60 = vadd.f32 2.0, %v646_v56  ;;  %v263_v61 = vadd.f32 2.0, %v257_v54  ;;  %647 = vrcp.f32 %v262_v55 }
  0xf4   :  { %649 = vrcp.f32 %v267_v57  ;;  %v264_v62 = vadd.f32 2.0, %v258_v58 }
  0xf5   :  { %v265_v63 = vadd.f32 2.0, %v259_v59  ;;  %v260_v0 = vmul.f32 %v646_v56, %v254_v60  ;;  %651 = vrcp.f32 %v263_v61  ;;  %v497_v56 = vpop.permute.xlu1 %496 }
  0xf6   :  { %653 = vrcp.f32 %v264_v62 }
  0xf7   :  { %655 = vrcp.f32 %v265_v63  ;;  %v266_v2 = vadd.f32 2.0, %v260_v0 }
  0xf9   :  { %657 = vrcp.f32 %v266_v2 }
 0x100   :  { %v648_v3 = vpop.eup %647 }
 0x101   :  { %v650_v4 = vpop.eup %649  ;;  %v274_v16 = vmul.f32 %v648_v3, %v256_v49 }
 0x102   :  { %v652_v5 = vpop.eup %651  ;;  %v279_v6 = vmul.f32 %v650_v4, %v261_v51 }
 0x103   :  { %v654_v7 = vpop.eup %653  ;;  %v275_v12 = vmul.f32 %v652_v5, %v257_v54  ;;  %v286_v25 = vmul.f32 %v274_v16, %v798_v19 }
 0x104   :  { %v656_v8 = vpop.eup %655  ;;  %v291_v9 = vmul.f32 %v279_v6, %v800_v21  ;;  %v276_v10 = vmul.f32 %v654_v7, %v258_v58 }
 0x105   :  { %v277_v11 = vmul.f32 %v656_v8, %v259_v59  ;;  %v287_v23 = vmul.f32 %v275_v12, %v803_v24  ;;  %v292_v28 = vsel %vm280_vm10, %v798_v19, %v286_v25  ;;  %v526_v59 = vlaneseq }
 0x106   :  { %v658_v13 = vpop.eup %657  ;;  %v297_v14 = vsel %vm285_vm4, %v800_v21, %v291_v9  ;;  %v288_v15 = vmul.f32 %v276_v10, %v806_v27 }
 0x107   :  { %619 = vmatpush3.msk.msra.mxu0 %vm309_vm3, %v297_v14  ;;  %v278_v18 = vmul.f32 %v658_v13, %v260_v0  ;;  %v289_v20 = vmul.f32 %v277_v11, %v809_v31  ;;  %v527_v3 = vshrl.u32 %v526_v59, 7  ;;  %v524_v14 = vpop.permute.xlu0 %523  ;;  %vm574_vm14 = vcmp.lt.s32.totalorder %v526_v59, 384 }
 0x108   :  { %620 = vmatprep.subr.mxu0 %v724_v1  ;;  %v294_v22 = vsel %vm282_vm5, %v806_v27, %v288_v15  ;;  %v293_v27 = vsel %vm281_vm9, %v803_v24, %v287_v23 }
 0x109   :  { %621 = vmatpush3.msra.mxu0 %v294_v22  ;;  %v290_v21 = vmul.f32 %v278_v18, %v813_v37  ;;  %v295_v1 = vsel %vm283_vm8, %v809_v31, %v289_v20  ;;  %v528_v10 = vsub.s32 0, %v527_v3 }
 0x10a   :  { %623 = vmatmul.mubr.msk.f32.vlgmr.msra.gmra.mxu0 %vm305_vm6, %v298_v17 }
 0x10b   :  { %v296_v26 = vsel %vm284_vm7, %v813_v37, %v290_v21  ;;  %v529_v18 = vrot.slane %v524_v14, %v528_v10 }
 0x10c   :  { %599 = vmatprep.subr.msk.mxu1 %vm309_vm3, %v296_v26 }
 0x10d   :  { %600 = vmatpush1.msk.msra.mxu1 %vm309_vm3, %v295_v1 }
 0x10e   :  { %349 = vmatprep.subr.mxu1 %v293_v27 }
 0x10f   :  { %350 = vmatpush1.msra.mxu1 %v292_v28 }
 0x110   :  { %601 = vmatmul.mubr.msk.f32.vlgmr.msra.gmra.mxu1 %vm305_vm6, %v298_v17 }
 0x1ca   :  { %v456_v30 = vpop.f32.mrf.mxu0 }
 0x1cb   :  { %v457_v32 = vadd.f32 %v456_v30, %v303_v29 }
 0x1cc   :  { %v624_v33 = vpop.f32.mrf.mxu0 }
 0x1cd   :  { %v462_v34 = vmin.f32 %v457_v32, 20.0  ;;  %vm486_vm11 = vcmp.gt.f32.partialorder %v457_v32, 20.0 }
 0x1cf   :  { %v467_v31 = vmul.f32 1.442695, %v462_v34 }
 0x1d0   :  { %v385_v35 = vpop.f32.mrf.mxu1 }
 0x1d1   :  { %659 = vpow2.f32 %v467_v31  ;;  %v386_v36 = vadd.f32 %v385_v35, %v303_v29 }
 0x1d2   :  { %v387_v37 = vpop.f32.mrf.mxu1 }
 0x1d3   :  { %v460_v38 = vmin.f32 %v386_v36, 20.0  ;;  %v388_v24 = vadd.f32 %v387_v37, %v303_v29  ;;  %vm484_vm12 = vcmp.gt.f32.partialorder %v386_v36, 20.0 }
 0x1d5   :  { %v463_v39 = vmul.f32 1.442695, %v460_v38  ;;  %v461_v40 = vmin.f32 %v388_v24, 20.0  ;;  %vm485_vm13 = vcmp.gt.f32.partialorder %v388_v24, 20.0 }
 0x1d7   :  { %661 = vpow2.f32 %v463_v39  ;;  %v465_v41 = vmul.f32 1.442695, %v461_v40 }
 0x1d9   :  { %663 = vpow2.f32 %v465_v41 }
 0x1de   :  { %v660_v19 = vpop.eup %659 }
 0x1df   :  { %v471_v42 = vadd.f32 2.0, %v660_v19 }
 0x1e1   :  { %v474_v43 = vmul.f32 %v660_v19, %v471_v42 }
 0x1e3   :  { %v477_v44 = vadd.f32 2.0, %v474_v43 }
 0x1e4   :  { %v662_v45 = vpop.eup %661 }
 0x1e5   :  { %v469_v46 = vadd.f32 2.0, %v662_v45  ;;  %665 = vrcp.f32 %v477_v44 }
 0x1e6   :  { %v664_v47 = vpop.eup %663 }
 0x1e7   :  { %v470_v48 = vadd.f32 2.0, %v664_v47  ;;  %v472_v49 = vmul.f32 %v662_v45, %v469_v46 }
 0x1e9   :  { %v473_v50 = vmul.f32 %v664_v47, %v470_v48  ;;  %v475_v51 = vadd.f32 2.0, %v472_v49 }
 0x1eb   :  { %v476_v52 = vadd.f32 2.0, %v473_v50  ;;  %667 = vrcp.f32 %v475_v51 }
 0x1ed   :  { %669 = vrcp.f32 %v476_v52 }
 0x1f2   :  { %v666_v53 = vpop.eup %665 }
 0x1f3   :  { %v483_v54 = vmul.f32 %v666_v53, %v474_v43 }
 0x1f5   :  { %v489_v55 = vmul.f32 %v483_v54, %v457_v32 }
 0x1f7   :  { %v492_v57 = vsel %vm486_vm11, %v457_v32, %v489_v55 }
 0x1f8   :  { %v668_v58 = vpop.eup %667  ;;  %v501_v60 = vmul.f32 %v497_v56, %v492_v57 }
 0x1f9   :  { %v481_v61 = vmul.f32 %v668_v58, %v472_v49 }
 0x1fa   :  { %v670_v62 = vpop.eup %669  ;;  %v514_v63 = vrot.slane %v501_v60, 4 }
 0x1fb   :  { %v482_v0 = vmul.f32 %v670_v62, %v473_v50  ;;  %v487_v2 = vmul.f32 %v481_v61, %v386_v36 }
 0x1fc   :  { %v515_v4 = vadd.f32 %v514_v63, %v501_v60 }
 0x1fd   :  { %v488_v5 = vmul.f32 %v482_v0, %v388_v24  ;;  %v490_v6 = vsel %vm484_vm12, %v386_v36, %v487_v2  ;;  %v727_v36 = vmov 1966171168  }
 0x1fe   :  { %v499_v7 = vmul.f32 %v497_v56, %v490_v6  ;;  %v516_v8 = vrot.slane %v515_v4, 2  ;;  %v550_v37 = vunpack.c.l.s4 %v727_v36 }
 0x1ff   :  { %v491_v9 = vsel %vm485_vm13, %v388_v24, %v488_v5 }
 0x200   :  { %v500_v11 = vmul.f32 %v497_v56, %v491_v9  ;;  %v502_v12 = vrot.slane %v499_v7, 4  ;;  %v517_v13 = vadd.f32 %v516_v8, %v515_v4  ;;  %v551_v39 = vunpack.c.0.s8 %v550_v37 }
 0x202   :  { %v503_v15 = vadd.f32 %v502_v12, %v499_v7  ;;  %v508_v16 = vrot.slane %v500_v11, 4  ;;  %v518_v17 = vrot.slane %v517_v13, 1  ;;  %v554_v43 = vsub.s32 %v551_v39, %v527_v3 }
 0x204   :  { %v504_v20 = vrot.slane %v503_v15, 2  ;;  %v509_v22 = vadd.f32 %v508_v16, %v500_v11  ;;  %v519_v21 = vadd.f32 %v518_v17, %v517_v13 }
 0x206   :  { %v505_v23 = vadd.f32 %v504_v20, %v503_v15  ;;  %v510_v25 = vrot.slane %v509_v22, 2  ;;  %v532_v26 = vadd.f32 %v529_v18, %v519_v21 }
 0x208   :  { %v506_v1 = vrot.slane %v505_v23, 1  ;;  %v511_v27 = vadd.f32 %v510_v25, %v509_v22  ;;  %v535_v30 = vmul.f32 0.5, %v532_v26 }
 0x20a   :  { %v507_v28 = vadd.f32 %v506_v1, %v505_v23  ;;  %v512_v29 = vrot.slane %v511_v27, 1  ;;  %671 = vtanh.f32 %v535_v30 }
 0x20c   :  { %v513_v32 = vadd.f32 %v512_v29, %v511_v27  ;;  %v530_v33 = vadd.f32 %v529_v18, %v507_v28 }
 0x20e   :  { %v531_v34 = vadd.f32 %v529_v18, %v513_v32  ;;  %v533_v31 = vmul.f32 0.5, %v530_v33 }
 0x210   :  { %v534_v35 = vmul.f32 0.5, %v531_v34  ;;  %673 = vtanh.f32 %v533_v31 }
 0x212   :  { %675 = vtanh.f32 %v534_v35 }
 0x217   :  { %v672_v38 = vpop.eup %671 }
 0x218   :  { %v541_v41 = vmul.f32 0.5, %v672_v38 }
 0x21a   :  { %v544_v46 = vadd.f32 0.5, %v541_v41 }
 0x21c   :  { %v562_v49 = vrot.slane %v544_v46, %v554_v43 }
 0x21d   :  { %v674_v24 = vpop.eup %673 }
 0x21e   :  { %v539_v40 = vmul.f32 0.5, %v674_v24 }
 0x21f   :  { %v676_v19 = vpop.eup %675 }
 0x220   :  { %v540_v42 = vmul.f32 0.5, %v676_v19  ;;  %v542_v44 = vadd.f32 0.5, %v539_v40 }
 0x222   :  { %v543_v45 = vadd.f32 0.5, %v540_v42 }
 0x224   :  { %v548_v47 = vcombine.low %v542_v44, %v543_v45 }
 0x226   :  { %v555_v48 = vrot.slane %v548_v47, %v554_v43 }
 0x228   :  { %v563_v50 = vcombine.low %v555_v48, %v562_v49 }
 0x22a   :  { %v570_v51 = vrot.slane %v563_v50, %v554_v43 }
 0x22c   :  { %576 = vst.msk [vmem:[#allocation6] sm:$0x7] %vm574_vm14, %v570_v51 }
 0x22d   :  { %708 = shalt.err (!%p705_p9)
}
 0x22e   :  { %586 = dma.vmem_to_hbm [thread:$0]  %s584_s5, 48, %s855_s7, [#allocation5]  }
 0x22f   :  { %719 = dma.done.wait [#allocation5], 48  }
 0x230   :  { %720 = vsyncadd [#allocation5], 4294967248 }
 0x231   :  { %590 = vsyncpa [#allocation4], 1 }
 0x232   :  { %591 = vsyncpa [#allocation5], 1 }

</bundles_post_ra>
